<compile_context>
chip_gen: v5e
topology: v5e:2x2
jax: 0.10.0
libtpu: 0.0.40
codegen_flags: <defaults>
</compile_context>

<pallas_src>
import functools
import math

import jax
import jax.numpy as jnp
from jax.experimental import pallas as pl
from jax.experimental.pallas import tpu as pltpu


_VMEM_LIMIT_BYTES = 48 * 1024 * 1024  # > scoped defaults, < v7x 64 MiB physical VMEM.


def _round_up(x, m):
    return ((x + m - 1) // m) * m


def _pad2(a, rows, cols):
    a = jnp.asarray(a, jnp.float32)
    return jnp.pad(a, ((0, rows - a.shape[0]), (0, cols - a.shape[1])))


def _choose_tiles(n, n_hidden, n_class):
    """Node padding + adj tile sizes (tm rows, tk cols). tm | n_pad and tk | n_pad."""
    if n <= 512:
        p = _round_up(n, 128)
        return p, p, p

    n_pad = _round_up(n, 128)          # tight padding: lane/sublane alignment only
    h_pad = _round_up(n_hidden, 128)
    c_pad = _round_up(n_class, 128)
    # Prefer tm=512 (fewer grid steps, >=2 / even row tiles for v7x megacore) when it
    # divides n_pad; otherwise fall back so tiles always divide evenly.
    tm = next(t for t in (512, 256, 128) if n_pad % t == 0)

    # VMEM estimate for the layer-1 fused kernel with a FULL adj row stripe
    # (double-buffered adj stripe + double-buffered resident s1/W2 + out tiles + acc).
    est = (2 * tm * n_pad * 2
           + 2 * n_pad * h_pad * 2
           + 2 * h_pad * c_pad * 2
           + 2 * tm * max(h_pad, c_pad) * 2
           + tm * max(h_pad, c_pad) * 4)
    if est <= _VMEM_LIMIT_BYTES - 8 * 1024 * 1024:
        return n_pad, tm, n_pad        # one k step per row tile

    # Very large graphs: stream adj in (512, 2048) tiles; pad so tiles divide evenly.
    n_pad = _round_up(n, 2048)
    return n_pad, 512, 2048


# --------------------------------------------------------------------------- #
# Kernel A: support = x @ W   (row-tiled dense matmul, weights resident)
# --------------------------------------------------------------------------- #
def _xw_kernel(x_ref, w_ref, out_ref):
    out_ref[...] = jnp.dot(
        x_ref[...], w_ref[...], preferred_element_type=jnp.float32
    ).astype(out_ref.dtype)


def _xw(x_p, w_p, *, tm):
    n_pad, f_pad = x_p.shape
    o_pad = w_p.shape[1]
    return pl.pallas_call(
        _xw_kernel,
        out_shape=jax.ShapeDtypeStruct((n_pad, o_pad), jnp.bfloat16),
        grid_spec=pltpu.PrefetchScalarGridSpec(
            num_scalar_prefetch=0,
            grid=(n_pad // tm,),
            in_specs=[
                pl.BlockSpec((tm, f_pad), lambda i: (i, 0)),
                pl.BlockSpec((f_pad, o_pad), lambda i: (0, 0)),   # W resident
            ],
            out_specs=pl.BlockSpec((tm, o_pad), lambda i: (i, 0)),
        ),
        compiler_params=pltpu.CompilerParams(
            dimension_semantics=("parallel",),
            vmem_limit_bytes=_VMEM_LIMIT_BYTES,
        ),
    )(x_p, w_p)


# --------------------------------------------------------------------------- #
# Kernel B: s2 = relu(adj @ s1 + b1) @ W2   (adj streams; s1 / b1 / W2 resident)
# --------------------------------------------------------------------------- #
def _layer1_kernel(adj_ref, s_ref, b_ref, w2_ref, out_ref, acc_ref, *, tk):
    k = pl.program_id(1)

    @pl.when(k == 0)
    def _():
        acc_ref[...] = jnp.zeros_like(acc_ref)

    start = pl.multiple_of(k * tk, 128)
    acc_ref[...] += jnp.dot(
        adj_ref[...], s_ref[pl.ds(start, tk), :], preferred_element_type=jnp.float32
    )

    @pl.when(k == pl.num_programs(1) - 1)
    def _():
        h = jnp.maximum(acc_ref[...] + b_ref[...], 0.0)       # relu(adj@s1 + b1), f32
        # Fused second GraphConvolution support: s2 = h @ W2 (dropout = identity).
        out_ref[...] = jnp.dot(
            h.astype(jnp.bfloat16), w2_ref[...], preferred_element_type=jnp.float32
        ).astype(out_ref.dtype)


def _adj_relu_w2(adj_p, s1, b1_p, w2_p, *, tm, tk):
    n_pad = adj_p.shape[0]
    h_pad = s1.shape[1]
    c_pad = w2_p.shape[1]
    return pl.pallas_call(
        functools.partial(_layer1_kernel, tk=tk),
        out_shape=jax.ShapeDtypeStruct((n_pad, c_pad), jnp.bfloat16),
        grid_spec=pltpu.PrefetchScalarGridSpec(
            num_scalar_prefetch=0,
            grid=(n_pad // tm, n_pad // tk),
            in_specs=[
                pl.BlockSpec((tm, tk), lambda i, k: (i, k)),        # adj tile (streams)
                pl.BlockSpec((n_pad, h_pad), lambda i, k: (0, 0)),  # s1 resident
                pl.BlockSpec((1, h_pad), lambda i, k: (0, 0)),      # b1 resident
                pl.BlockSpec((h_pad, c_pad), lambda i, k: (0, 0)),  # W2 resident
            ],
            out_specs=pl.BlockSpec((tm, c_pad), lambda i, k: (i, 0)),
            scratch_shapes=[pltpu.VMEM((tm, h_pad), jnp.float32)],
        ),
        compiler_params=pltpu.CompilerParams(
            dimension_semantics=("parallel", "arbitrary"),
            vmem_limit_bytes=_VMEM_LIMIT_BYTES,
        ),
    )(adj_p, s1, b1_p, w2_p)


# --------------------------------------------------------------------------- #
# Kernel C: out = log_softmax(adj @ s2 + b2)   (adj streams; s2 / b2 resident)
# --------------------------------------------------------------------------- #
def _layer2_kernel(adj_ref, s_ref, b_ref, out_ref, acc_ref, *, tk, n_class):
    k = pl.program_id(1)

    @pl.when(k == 0)
    def _():
        acc_ref[...] = jnp.zeros_like(acc_ref)

    start = pl.multiple_of(k * tk, 128)
    acc_ref[...] += jnp.dot(
        adj_ref[...], s_ref[pl.ds(start, tk), :], preferred_element_type=jnp.float32
    )

    @pl.when(k == pl.num_programs(1) - 1)
    def _():
        o = acc_ref[...] + b_ref[...]
        # Mask padded class lanes with a plain Python float (a module-level jnp
        # scalar here would be a closure-captured constant -> pallas_call error).
        col = jax.lax.broadcasted_iota(jnp.int32, o.shape, 1)
        o = jnp.where(col < n_class, o, -1e30)
        m = jnp.max(o, axis=1, keepdims=True)
        shifted = o - m
        lse = jnp.log(jnp.sum(jnp.exp(shifted), axis=1, keepdims=True))
        out_ref[...] = (shifted - lse).astype(out_ref.dtype)


def _adj_logsoftmax(adj_p, s2, b2_p, *, tm, tk, n_class):
    n_pad = adj_p.shape[0]
    c_pad = s2.shape[1]
    return pl.pallas_call(
        functools.partial(_layer2_kernel, tk=tk, n_class=n_class),
        out_shape=jax.ShapeDtypeStruct((n_pad, c_pad), jnp.float32),
        grid_spec=pltpu.PrefetchScalarGridSpec(
            num_scalar_prefetch=0,
            grid=(n_pad // tm, n_pad // tk),
            in_specs=[
                pl.BlockSpec((tm, tk), lambda i, k: (i, k)),        # adj tile (streams)
                pl.BlockSpec((n_pad, c_pad), lambda i, k: (0, 0)),  # s2 resident
                pl.BlockSpec((1, c_pad), lambda i, k: (0, 0)),      # b2 resident
            ],
            out_specs=pl.BlockSpec((tm, c_pad), lambda i, k: (i, 0)),
            scratch_shapes=[pltpu.VMEM((tm, c_pad), jnp.float32)],
        ),
        compiler_params=pltpu.CompilerParams(
            dimension_semantics=("parallel", "arbitrary"),
            vmem_limit_bytes=_VMEM_LIMIT_BYTES,
        ),
    )(adj_p, s2, b2_p)


# --------------------------------------------------------------------------- #
# Full GCN forward
# --------------------------------------------------------------------------- #
def precompute_adj(adj, n_pad):
    """Pad + cast the (static) adjacency ONCE, outside the per-step jitted forward."""
    return _pad2(adj, n_pad, n_pad).astype(jnp.bfloat16)


def gcn_forward(x, adj_p, w1, b1, w2, b2, *, tm, tk):
    """adj_p is the pre-padded (n_pad, n_pad) bf16 adjacency from precompute_adj()."""
    n, f = x.shape
    h = w1.shape[1]
    c = w2.shape[1]
    n_pad = adj_p.shape[0]
    f_pad = _round_up(f, 128)
    h_pad = _round_up(h, 128)
    c_pad = _round_up(c, 128)

    # Pad to lane-dense shapes; cast MXU operands to bf16, keep biases f32.
    x_p = _pad2(x, n_pad, f_pad).astype(jnp.bfloat16)
    w1_p = _pad2(w1, f_pad, h_pad).astype(jnp.bfloat16)
    w2_p = _pad2(w2, h_pad, c_pad).astype(jnp.bfloat16)
    b1_p = _pad2(jnp.reshape(b1, (1, -1)), 1, h_pad)
    b2_p = _pad2(jnp.reshape(b2, (1, -1)), 1, c_pad)

    # Layer 1 (+ fused layer-2 support): s2 = relu(adj @ (x @ W1) + b1) @ W2
    s1 = _xw(x_p, w1_p, tm=tm)                                    # (n_pad, h_pad) bf16
    s2 = _adj_relu_w2(adj_p, s1, b1_p, w2_p, tm=tm, tk=tk)        # (n_pad, c_pad) bf16
    # Dropout: identity in inference mode (see TODO at top).

    # Layer 2: out = log_softmax(adj @ s2 + b2, axis=1)
    out = _adj_logsoftmax(adj_p, s2, b2_p, tm=tm, tk=tk, n_class=c)   # (n_pad, c_pad) f32

    return out[:n, :c]


def init_gcn_params(key, n_features, n_hidden, n_class):
    """Matches GraphConvolution.reset_parameters: uniform(-stdv, stdv),
    stdv = 1/sqrt(out_features)."""
    k1, k2, k3, k4 = jax.random.split(key, 4)
    stdv1 = 1.0 / math.sqrt(n_hidden)
    stdv2 = 1.0 / math.sqrt(n_class)
    w1 = jax.random.uniform(k1, (n_features, n_hidden), jnp.float32, -stdv1, stdv1)
    b1 = jax.random.uniform(k2, (1, n_hidden), jnp.float32, -stdv1, stdv1)
    w2 = jax.random.uniform(k3, (n_hidden, n_class), jnp.float32, -stdv2, stdv2)
    b2 = jax.random.uniform(k4, (1, n_class), jnp.float32, -stdv2, stdv2)
    return w1, b1, w2, b2


if __name__ == "__main__":
    N, N_FEATURES, N_HIDDEN, N_CLASS = 16, 16, 32, 8

    key = jax.random.PRNGKey(0)
    kx, ka, kp = jax.random.split(key, 3)

    # Node features
    x = jax.random.normal(kx, (N, N_FEATURES), jnp.float32)

    # Symmetric normalized dense adjacency (typical GCN preprocessing).
    a = (jax.random.uniform(ka, (N, N)) > 0.7).astype(jnp.float32)
    a = jnp.maximum(a, a.T) + jnp.eye(N, dtype=jnp.float32)
    deg = jnp.sum(a, axis=1)
    d_inv_sqrt = 1.0 / jnp.sqrt(deg)
    adj = a * d_inv_sqrt[:, None] * d_inv_sqrt[None, :]

    w1, b1, w2, b2 = init_gcn_params(kp, N_FEATURES, N_HIDDEN, N_CLASS)

    # adj is static for a GCN: pad + cast it once, OUTSIDE the jitted forward.
    n_pad, tm, tk = _choose_tiles(N, N_HIDDEN, N_CLASS)
    adj_p = precompute_adj(adj, n_pad)

    fwd = jax.jit(functools.partial(gcn_forward, tm=tm, tk=tk))
    out = fwd(x, adj_p, w1, b1, w2, b2)
    jax.block_until_ready(out)
    assert out.shape == (N, N_CLASS)

    # Reference 1: mirrors the kernel's bf16-operand / f32-accumulate math (tight).
    bf = lambda t: t.astype(jnp.bfloat16)
    s1_r = jnp.dot(bf(x), bf(w1), preferred_element_type=jnp.float32).astype(jnp.bfloat16)
    h_r = jnp.maximum(
        jnp.dot(bf(adj), s1_r, preferred_element_type=jnp.float32) + b1.reshape(1, -1),
        0.0,
    )
    s2_r = jnp.dot(bf(h_r), bf(w2), preferred_element_type=jnp.float32).astype(jnp.bfloat16)
    o_r = jnp.dot(bf(adj), s2_r, preferred_element_type=jnp.float32) + b2.reshape(1, -1)
    ref_bf16 = jax.nn.log_softmax(o_r, axis=1)
    assert jnp.allclose(out, ref_bf16, atol=2e-2, rtol=2e-2), float(
        jnp.max(jnp.abs(out - ref_bf16))
    )

    # Reference 2: pure-f32 PyTorch-equivalent math (loose, bf16 quantization error).
    h_f32 = jnp.maximum(adj @ (x @ w1) + b1.reshape(1, -1), 0.0)
    o_f32 = adj @ (h_f32 @ w2) + b2.reshape(1, -1)
    ref_f32 = jax.nn.log_softmax(o_f32, axis=1)
    assert jnp.allclose(out, ref_f32, atol=1e-1, rtol=1e-1), float(
        jnp.max(jnp.abs(out - ref_f32))
    )

    print("KERNEL_OK")
</pallas_src>

<mosaic_0001>
module attributes {stable_mosaic.version = 11 : i64} {
  func.func @_layer1_kernel(%arg0: i32, %arg1: i32, %arg2: memref<128x128xbf16, #tpu.memory_space<vmem>>, %arg3: memref<128x128xbf16, #tpu.memory_space<vmem>>, %arg4: memref<1x128xf32, #tpu.memory_space<vmem>>, %arg5: memref<128x128xbf16, #tpu.memory_space<vmem>>, %arg6: memref<128x128xbf16, #tpu.memory_space<vmem>>, %arg7: memref<128x128xf32, #tpu.memory_space<vmem>>) attributes {dimension_semantics = [#tpu.dimension_semantics<parallel>, #tpu.dimension_semantics<arbitrary>], iteration_bounds = array<i64: 1, 1>, scalar_prefetch = 0 : i64, scratch_operands = 1 : i64, tpu.core_type = #tpu.core_type<tc>, window_params = [{transform_indices = @transform_0, window_bounds = array<i64: 128, 128>}, {pipeline_mode = #tpu.pipeline_mode<synchronous>, transform_indices = @transform_1, window_bounds = array<i64: 128, 128>}, {pipeline_mode = #tpu.pipeline_mode<synchronous>, transform_indices = @transform_2, window_bounds = array<i64: 1, 128>}, {pipeline_mode = #tpu.pipeline_mode<synchronous>, transform_indices = @transform_3, window_bounds = array<i64: 128, 128>}, {transform_indices = @transform_4, window_bounds = array<i64: 128, 128>}]} {
    %c0_i32 = arith.constant 0 : i32
    %0 = arith.cmpi eq, %arg1, %c0_i32 : i32
    %1 = arith.extui %0 : i1 to i32
    %c0_i32_0 = arith.constant 0 : i32
    %2 = arith.cmpi ne, %1, %c0_i32_0 : i32
    scf.if %2 {
      %cst_9 = arith.constant 0.000000e+00 : f32
      %15 = vector.broadcast %cst_9 : f32 to vector<128x128xf32>
      %c0_10 = arith.constant 0 : index
      %c0_11 = arith.constant 0 : index
      %16 = vector.load %arg7[%c0_10, %c0_11] : memref<128x128xf32, #tpu.memory_space<vmem>>, vector<128x128xf32>
      tpu.vector_store %arg7[%c0_10, %c0_11], %15 {strides = array<i32>} : memref<128x128xf32, #tpu.memory_space<vmem>>, vector<128x128xf32>,
    } else {
    }
    %c128_i32 = arith.constant 128 : i32
    %3 = arith.muli %arg1, %c128_i32 : i32
    %4 = tpu.assume_multiple %3, 128 : i32
    %c0 = arith.constant 0 : index
    %c0_1 = arith.constant 0 : index
    %5 = vector.load %arg7[%c0, %c0_1] : memref<128x128xf32, #tpu.memory_space<vmem>>, vector<128x128xf32>
    %c0_2 = arith.constant 0 : index
    %c0_3 = arith.constant 0 : index
    %6 = vector.load %arg2[%c0_2, %c0_3] : memref<128x128xbf16, #tpu.memory_space<vmem>>, vector<128x128xbf16>
    %7 = arith.index_cast %4 : i32 to index
    %c0_4 = arith.constant 0 : index
    %8 = vector.load %arg3[%7, %c0_4] : memref<128x128xbf16, #tpu.memory_space<vmem>>, vector<128x128xbf16>
    %cst = arith.constant dense<0.000000e+00> : vector<128x128xf32>
    %9 = tpu.matmul %6, %8, %cst {dimension_numbers = #tpu.dot_dimension_numbers<[1], [0], [0], [1], [0, 0, 1, 1], [], []>} : vector<128x128xbf16>, vector<128x128xbf16>, vector<128x128xf32> -> vector<128x128xf32>
    %10 = arith.addf %5, %9 : vector<128x128xf32>
    %c0_5 = arith.constant 0 : index
    %c0_6 = arith.constant 0 : index
    %11 = vector.load %arg7[%c0_5, %c0_6] : memref<128x128xf32, #tpu.memory_space<vmem>>, vector<128x128xf32>
    tpu.vector_store %arg7[%c0_5, %c0_6], %10 {strides = array<i32>} : memref<128x128xf32, #tpu.memory_space<vmem>>, vector<128x128xf32>,
    %c0_i32_7 = arith.constant 0 : i32
    %12 = arith.cmpi eq, %arg1, %c0_i32_7 : i32
    %13 = arith.extui %12 : i1 to i32
    %c0_i32_8 = arith.constant 0 : i32
    %14 = arith.cmpi ne, %13, %c0_i32_8 : i32
    scf.if %14 {
      %c0_9 = arith.constant 0 : index
      %c0_10 = arith.constant 0 : index
      %15 = vector.load %arg7[%c0_9, %c0_10] : memref<128x128xf32, #tpu.memory_space<vmem>>, vector<128x128xf32>
      %c0_11 = arith.constant 0 : index
      %c0_12 = arith.constant 0 : index
      %16 = vector.load %arg4[%c0_11, %c0_12] : memref<1x128xf32, #tpu.memory_space<vmem>>, vector<1x128xf32>
      %17 = vector.broadcast %16 : vector<1x128xf32> to vector<128x128xf32>
      %18 = arith.addf %15, %17 : vector<128x128xf32>
      %cst_13 = arith.constant 0.000000e+00 : f32
      %19 = vector.broadcast %cst_13 : f32 to vector<128x128xf32>
      %20 = arith.maximumf %18, %19 : vector<128x128xf32>
      %21 = arith.truncf %20 : vector<128x128xf32> to vector<128x128xbf16>
      %c0_14 = arith.constant 0 : index
      %c0_15 = arith.constant 0 : index
      %22 = vector.load %arg5[%c0_14, %c0_15] : memref<128x128xbf16, #tpu.memory_space<vmem>>, vector<128x128xbf16>
      %cst_16 = arith.constant dense<0.000000e+00> : vector<128x128xf32>
      %23 = tpu.matmul %21, %22, %cst_16 {dimension_numbers = #tpu.dot_dimension_numbers<[1], [0], [0], [1], [0, 0, 1, 1], [], []>} : vector<128x128xbf16>, vector<128x128xbf16>, vector<128x128xf32> -> vector<128x128xf32>
      %24 = arith.truncf %23 : vector<128x128xf32> to vector<128x128xbf16>
      %c0_17 = arith.constant 0 : index
      %c0_18 = arith.constant 0 : index
      %25 = vector.load %arg6[%c0_17, %c0_18] : memref<128x128xbf16, #tpu.memory_space<vmem>>, vector<128x128xbf16>
      tpu.vector_store %arg6[%c0_17, %c0_18], %24 {strides = array<i32>} : memref<128x128xbf16, #tpu.memory_space<vmem>>, vector<128x128xbf16>,
    } else {
    }
    return
  }
  func.func @transform_0(%arg0: i32, %arg1: i32) -> (i32, i32) {
    %c0_i32 = arith.constant 0 : i32
    return %arg0, %arg1 : i32, i32
  }
  func.func @transform_1(%arg0: i32, %arg1: i32) -> (i32, i32) {
    %c0_i32 = arith.constant 0 : i32
    %c0_i32_0 = arith.constant 0 : i32
    %c0_i32_1 = arith.constant 0 : i32
    return %c0_i32, %c0_i32_0 : i32, i32
  }
  func.func @transform_2(%arg0: i32, %arg1: i32) -> (i32, i32) {
    %c0_i32 = arith.constant 0 : i32
    %c0_i32_0 = arith.constant 0 : i32
    %c0_i32_1 = arith.constant 0 : i32
    return %c0_i32, %c0_i32_0 : i32, i32
  }
  func.func @transform_3(%arg0: i32, %arg1: i32) -> (i32, i32) {
    %c0_i32 = arith.constant 0 : i32
    %c0_i32_0 = arith.constant 0 : i32
    %c0_i32_1 = arith.constant 0 : i32
    return %c0_i32, %c0_i32_0 : i32, i32
  }
  func.func @transform_4(%arg0: i32, %arg1: i32) -> (i32, i32) {
    %c0_i32 = arith.constant 0 : i32
    %c0_i32_0 = arith.constant 0 : i32
    return %arg0, %c0_i32 : i32, i32
  }
}

module attributes {stable_mosaic.version = 11 : i64} {
  func.func @_xw_kernel(%arg0: i32, %arg1: memref<128x128xbf16, #tpu.memory_space<vmem>>, %arg2: memref<128x128xbf16, #tpu.memory_space<vmem>>, %arg3: memref<128x128xbf16, #tpu.memory_space<vmem>>) attributes {dimension_semantics = [#tpu.dimension_semantics<parallel>], iteration_bounds = array<i64: 1>, scalar_prefetch = 0 : i64, scratch_operands = 0 : i64, tpu.core_type = #tpu.core_type<tc>, window_params = [{transform_indices = @transform_0, window_bounds = array<i64: 128, 128>}, {pipeline_mode = #tpu.pipeline_mode<synchronous>, transform_indices = @transform_1, window_bounds = array<i64: 128, 128>}, {transform_indices = @transform_2, window_bounds = array<i64: 128, 128>}]} {
    %c0 = arith.constant 0 : index
    %c0_0 = arith.constant 0 : index
    %0 = vector.load %arg1[%c0, %c0_0] : memref<128x128xbf16, #tpu.memory_space<vmem>>, vector<128x128xbf16>
    %c0_1 = arith.constant 0 : index
    %c0_2 = arith.constant 0 : index
    %1 = vector.load %arg2[%c0_1, %c0_2] : memref<128x128xbf16, #tpu.memory_space<vmem>>, vector<128x128xbf16>
    %cst = arith.constant dense<0.000000e+00> : vector<128x128xf32>
    %2 = tpu.matmul %0, %1, %cst {dimension_numbers = #tpu.dot_dimension_numbers<[1], [0], [0], [1], [0, 0, 1, 1], [], []>} : vector<128x128xbf16>, vector<128x128xbf16>, vector<128x128xf32> -> vector<128x128xf32>
    %3 = arith.truncf %2 : vector<128x128xf32> to vector<128x128xbf16>
    %c0_3 = arith.constant 0 : index
    %c0_4 = arith.constant 0 : index
    %4 = vector.load %arg3[%c0_3, %c0_4] : memref<128x128xbf16, #tpu.memory_space<vmem>>, vector<128x128xbf16>
    tpu.vector_store %arg3[%c0_3, %c0_4], %3 {strides = array<i32>} : memref<128x128xbf16, #tpu.memory_space<vmem>>, vector<128x128xbf16>,
    return
  }
  func.func @transform_0(%arg0: i32) -> (i32, i32) {
    %c0_i32 = arith.constant 0 : i32
    %c0_i32_0 = arith.constant 0 : i32
    return %arg0, %c0_i32 : i32, i32
  }
  func.func @transform_1(%arg0: i32) -> (i32, i32) {
    %c0_i32 = arith.constant 0 : i32
    %c0_i32_0 = arith.constant 0 : i32
    %c0_i32_1 = arith.constant 0 : i32
    return %c0_i32, %c0_i32_0 : i32, i32
  }
  func.func @transform_2(%arg0: i32) -> (i32, i32) {
    %c0_i32 = arith.constant 0 : i32
    %c0_i32_0 = arith.constant 0 : i32
    return %arg0, %c0_i32 : i32, i32
  }
}

module attributes {stable_mosaic.version = 11 : i64} {
  func.func @_layer2_kernel(%arg0: i32, %arg1: i32, %arg2: memref<128x128xbf16, #tpu.memory_space<vmem>>, %arg3: memref<128x128xbf16, #tpu.memory_space<vmem>>, %arg4: memref<1x128xf32, #tpu.memory_space<vmem>>, %arg5: memref<128x128xf32, #tpu.memory_space<vmem>>, %arg6: memref<128x128xf32, #tpu.memory_space<vmem>>) attributes {dimension_semantics = [#tpu.dimension_semantics<parallel>, #tpu.dimension_semantics<arbitrary>], iteration_bounds = array<i64: 1, 1>, scalar_prefetch = 0 : i64, scratch_operands = 1 : i64, tpu.core_type = #tpu.core_type<tc>, window_params = [{transform_indices = @transform_0, window_bounds = array<i64: 128, 128>}, {pipeline_mode = #tpu.pipeline_mode<synchronous>, transform_indices = @transform_1, window_bounds = array<i64: 128, 128>}, {pipeline_mode = #tpu.pipeline_mode<synchronous>, transform_indices = @transform_2, window_bounds = array<i64: 1, 128>}, {transform_indices = @transform_3, window_bounds = array<i64: 128, 128>}]} {
    %c0_i32 = arith.constant 0 : i32
    %0 = arith.cmpi eq, %arg1, %c0_i32 : i32
    %1 = arith.extui %0 : i1 to i32
    %c0_i32_0 = arith.constant 0 : i32
    %2 = arith.cmpi ne, %1, %c0_i32_0 : i32
    scf.if %2 {
      %cst_9 = arith.constant 0.000000e+00 : f32
      %15 = vector.broadcast %cst_9 : f32 to vector<128x128xf32>
      %c0_10 = arith.constant 0 : index
      %c0_11 = arith.constant 0 : index
      %16 = vector.load %arg6[%c0_10, %c0_11] : memref<128x128xf32, #tpu.memory_space<vmem>>, vector<128x128xf32>
      tpu.vector_store %arg6[%c0_10, %c0_11], %15 {strides = array<i32>} : memref<128x128xf32, #tpu.memory_space<vmem>>, vector<128x128xf32>,
    } else {
    }
    %c128_i32 = arith.constant 128 : i32
    %3 = arith.muli %arg1, %c128_i32 : i32
    %4 = tpu.assume_multiple %3, 128 : i32
    %c0 = arith.constant 0 : index
    %c0_1 = arith.constant 0 : index
    %5 = vector.load %arg6[%c0, %c0_1] : memref<128x128xf32, #tpu.memory_space<vmem>>, vector<128x128xf32>
    %c0_2 = arith.constant 0 : index
    %c0_3 = arith.constant 0 : index
    %6 = vector.load %arg2[%c0_2, %c0_3] : memref<128x128xbf16, #tpu.memory_space<vmem>>, vector<128x128xbf16>
    %7 = arith.index_cast %4 : i32 to index
    %c0_4 = arith.constant 0 : index
    %8 = vector.load %arg3[%7, %c0_4] : memref<128x128xbf16, #tpu.memory_space<vmem>>, vector<128x128xbf16>
    %cst = arith.constant dense<0.000000e+00> : vector<128x128xf32>
    %9 = tpu.matmul %6, %8, %cst {dimension_numbers = #tpu.dot_dimension_numbers<[1], [0], [0], [1], [0, 0, 1, 1], [], []>} : vector<128x128xbf16>, vector<128x128xbf16>, vector<128x128xf32> -> vector<128x128xf32>
    %10 = arith.addf %5, %9 : vector<128x128xf32>
    %c0_5 = arith.constant 0 : index
    %c0_6 = arith.constant 0 : index
    %11 = vector.load %arg6[%c0_5, %c0_6] : memref<128x128xf32, #tpu.memory_space<vmem>>, vector<128x128xf32>
    tpu.vector_store %arg6[%c0_5, %c0_6], %10 {strides = array<i32>} : memref<128x128xf32, #tpu.memory_space<vmem>>, vector<128x128xf32>,
    %c0_i32_7 = arith.constant 0 : i32
    %12 = arith.cmpi eq, %arg1, %c0_i32_7 : i32
    %13 = arith.extui %12 : i1 to i32
    %c0_i32_8 = arith.constant 0 : i32
    %14 = arith.cmpi ne, %13, %c0_i32_8 : i32
    scf.if %14 {
      %c0_9 = arith.constant 0 : index
      %c0_10 = arith.constant 0 : index
      %15 = vector.load %arg6[%c0_9, %c0_10] : memref<128x128xf32, #tpu.memory_space<vmem>>, vector<128x128xf32>
      %c0_11 = arith.constant 0 : index
      %c0_12 = arith.constant 0 : index
      %16 = vector.load %arg4[%c0_11, %c0_12] : memref<1x128xf32, #tpu.memory_space<vmem>>, vector<1x128xf32>
      %17 = vector.broadcast %16 : vector<1x128xf32> to vector<128x128xf32>
      %18 = arith.addf %15, %17 : vector<128x128xf32>
      %19 = tpu.iota {dimensions = array<i32: 1>} : vector<128x128xi32>
      %c8_i32 = arith.constant 8 : i32
      %20 = vector.broadcast %c8_i32 : i32 to vector<128x128xi32>
      %21 = arith.cmpi slt, %19, %20 : vector<128x128xi32>
      %cst_13 = arith.constant -1.000000e+30 : f32
      %22 = vector.broadcast %cst_13 : f32 to vector<128x128xf32>
      %23 = arith.select %21, %18, %22 : vector<128x128xi1>, vector<128x128xf32>
      %cst_14 = arith.constant dense<0xFF800000> : vector<128xf32>
      %24 = vector.multi_reduction <maximumf>, %23, %cst_14 [1] : vector<128x128xf32> to vector<128xf32>
      %25 = vector.shape_cast %24 : vector<128xf32> to vector<128x1xf32>
      %26 = vector.broadcast %25 : vector<128x1xf32> to vector<128x128xf32>
      %27 = arith.subf %23, %26 : vector<128x128xf32>
      %28 = math.exp %27 : vector<128x128xf32>
      %cst_15 = arith.constant dense<0.000000e+00> : vector<128xf32>
      %29 = vector.multi_reduction <add>, %28, %cst_15 [1] : vector<128x128xf32> to vector<128xf32>
      %30 = vector.shape_cast %29 : vector<128xf32> to vector<128x1xf32>
      %31 = math.log %30 : vector<128x1xf32>
      %32 = vector.broadcast %31 : vector<128x1xf32> to vector<128x128xf32>
      %33 = arith.subf %27, %32 : vector<128x128xf32>
      %c0_16 = arith.constant 0 : index
      %c0_17 = arith.constant 0 : index
      %34 = vector.load %arg5[%c0_16, %c0_17] : memref<128x128xf32, #tpu.memory_space<vmem>>, vector<128x128xf32>
      tpu.vector_store %arg5[%c0_16, %c0_17], %33 {strides = array<i32>} : memref<128x128xf32, #tpu.memory_space<vmem>>, vector<128x128xf32>,
    } else {
    }
    return
  }
  func.func @transform_0(%arg0: i32, %arg1: i32) -> (i32, i32) {
    %c0_i32 = arith.constant 0 : i32
    return %arg0, %arg1 : i32, i32
  }
  func.func @transform_1(%arg0: i32, %arg1: i32) -> (i32, i32) {
    %c0_i32 = arith.constant 0 : i32
    %c0_i32_0 = arith.constant 0 : i32
    %c0_i32_1 = arith.constant 0 : i32
    return %c0_i32, %c0_i32_0 : i32, i32
  }
  func.func @transform_2(%arg0: i32, %arg1: i32) -> (i32, i32) {
    %c0_i32 = arith.constant 0 : i32
    %c0_i32_0 = arith.constant 0 : i32
    %c0_i32_1 = arith.constant 0 : i32
    return %c0_i32, %c0_i32_0 : i32, i32
  }
  func.func @transform_3(%arg0: i32, %arg1: i32) -> (i32, i32) {
    %c0_i32 = arith.constant 0 : i32
    %c0_i32_0 = arith.constant 0 : i32
    return %arg0, %c0_i32 : i32, i32
  }
}

</mosaic_0001>

<bundles_post_ra>
// kernel: gcn_forward.3
= control target key start
LH: loop header
LB: loop body
LE: loop exit
PB: predicated region body
PF: predicated region fallthrough
CT: control target
= control target key end

     0   :  { %s462_s1 = inlined_call_operand.vmem [shape: bf16[128,128], index: 1, kind: input, shape index: {}]   ;;  %s463_s0 = inlined_call_operand.vmem [shape: bf16[128,128], index: 0, kind: input, shape index: {}]   ;;  %s464_s2 = inlined_call_operand.vmem [shape: bf16[128,128], index: 2, kind: output, shape index: {}]  }
   0x1   :  { %v303_v0 = vld [vmem:[%s462_s1 + $0x38] sm:$0xff]  ;;  %v302_v1 = vld [vmem:[%s462_s1 + $0x30] sm:$0xff]  ;;  %v301_v2 = vld [vmem:[%s462_s1 + $0x28] sm:$0xff] }
   0x2   :  { %139 = vmatpush.bf16.msra.mxu0 %v303_v0  ;;  %351 = vmatpush.bf16.msra.mxu1 %v303_v0  ;;  %v300_v3 = vld [vmem:[%s462_s1 + $0x20] sm:$0xff]  ;;  %v299_v4 = vld [vmem:[%s462_s1 + $0x18] sm:$0xff]  ;;  %v298_v5 = vld [vmem:[%s462_s1 + $0x10] sm:$0xff] }
   0x3   :  { %352 = vmatpush.bf16.msra.mxu2 %v303_v0  ;;  %353 = vmatpush.bf16.msra.mxu3 %v303_v0  ;;  %v297_v6 = vld [vmem:[%s462_s1 + $0x8] sm:$0xff]  ;;  %v296_v7 = vld [vmem:[%s462_s1] sm:$0xff]  ;;  %v290_v9 = vld [vmem:[%s463_s0 + $0x10] sm:$0xff] }
   0x4   :  { %v288_v8 = vld [vmem:[%s463_s0] sm:$0xff]  ;;  %v294_v11 = vld [vmem:[%s463_s0 + $0x30] sm:$0xff]  ;;  %v289_v12 = vld [vmem:[%s463_s0 + $0x8] sm:$0xff] }
   0x5   :  { %v292_v10 = vld [vmem:[%s463_s0 + $0x20] sm:$0xff]  ;;  %v291_v13 = vld [vmem:[%s463_s0 + $0x18] sm:$0xff]  ;;  %v293_v14 = vld [vmem:[%s463_s0 + $0x28] sm:$0xff] }
   0x6   :  { %140 = vmatpush.bf16.msra.mxu0 %v302_v1  ;;  %354 = vmatpush.bf16.msra.mxu1 %v302_v1  ;;  %v295_v15 = vld [vmem:[%s463_s0 + $0x38] sm:$0xff] }
   0x7   :  { %355 = vmatpush.bf16.msra.mxu2 %v302_v1  ;;  %356 = vmatpush.bf16.msra.mxu3 %v302_v1 }
   0xa   :  { %141 = vmatpush.bf16.msra.mxu0 %v301_v2  ;;  %357 = vmatpush.bf16.msra.mxu1 %v301_v2 }
   0xb   :  { %358 = vmatpush.bf16.msra.mxu2 %v301_v2  ;;  %359 = vmatpush.bf16.msra.mxu3 %v301_v2 }
   0xe   :  { %142 = vmatpush.bf16.msra.mxu0 %v300_v3  ;;  %360 = vmatpush.bf16.msra.mxu1 %v300_v3 }
   0xf   :  { %361 = vmatpush.bf16.msra.mxu2 %v300_v3  ;;  %362 = vmatpush.bf16.msra.mxu3 %v300_v3 }
  0x12   :  { %143 = vmatpush.bf16.msra.mxu0 %v299_v4  ;;  %363 = vmatpush.bf16.msra.mxu1 %v299_v4 }
  0x13   :  { %364 = vmatpush.bf16.msra.mxu2 %v299_v4  ;;  %365 = vmatpush.bf16.msra.mxu3 %v299_v4 }
  0x16   :  { %144 = vmatpush.bf16.msra.mxu0 %v298_v5  ;;  %366 = vmatpush.bf16.msra.mxu1 %v298_v5 }
  0x17   :  { %367 = vmatpush.bf16.msra.mxu2 %v298_v5  ;;  %368 = vmatpush.bf16.msra.mxu3 %v298_v5 }
  0x1a   :  { %145 = vmatpush.bf16.msra.mxu0 %v297_v6  ;;  %369 = vmatpush.bf16.msra.mxu1 %v297_v6 }
  0x1b   :  { %370 = vmatpush.bf16.msra.mxu2 %v297_v6  ;;  %371 = vmatpush.bf16.msra.mxu3 %v297_v6 }
  0x1e   :  { %146 = vmatpush.bf16.msra.mxu0 %v296_v7  ;;  %372 = vmatpush.bf16.msra.mxu1 %v296_v7 }
  0x1f   :  { %373 = vmatpush.bf16.msra.mxu2 %v296_v7  ;;  %374 = vmatpush.bf16.msra.mxu3 %v296_v7 }
  0x21   :  { %147 = vmatmul.bf16.vlgmr.msra.gmra.mxu0 %v288_v8  ;;  %157 = vmatmul.bf16.vlgmr.msra.gmra.mxu1 %v290_v9 }
  0x22   :  { %167 = vmatmul.bf16.vlgmr.msra.gmra.mxu2 %v292_v10  ;;  %177 = vmatmul.bf16.vlgmr.msra.gmra.mxu3 %v294_v11 }
  0x31   :  { %152 = vmatmul.bf16.gmra.mxu0 %v289_v12  ;;  %162 = vmatmul.bf16.gmra.mxu1 %v291_v13 }
  0x32   :  { %172 = vmatmul.bf16.gmra.mxu2 %v293_v14  ;;  %182 = vmatmul.bf16.gmra.mxu3 %v295_v15 }
  0x9e   :  { %v148_v16 = vpop.f32.mrf.mxu0  ;;  %v158_v17 = vpop.f32.mrf.mxu1 }
  0xa5   :  { %v168_v18 = vpop.f32.mrf.mxu2  ;;  %v178_v19 = vpop.f32.mrf.mxu3 }
  0xa6   :  { %v150_v20 = vpop.f32.mrf.mxu0  ;;  %v160_v21 = vpop.f32.mrf.mxu1 }
  0xa7   :  { %v307_v22 = vpack.c.bf16 %v150_v20, %v148_v16  ;;  %v317_v23 = vpack.c.bf16 %v160_v21, %v158_v17 }
  0xa9   :  { %308 = vst [vmem:[%s464_s2] sm:$0xff] %v307_v22  }
  0xaa   :  { %345 = vst [vmem:[%s464_s2 + $0x10] sm:$0xff] %v317_v23  }
  0xad   :  { %v170_v24 = vpop.f32.mrf.mxu2  ;;  %v180_v25 = vpop.f32.mrf.mxu3 }
  0xae   :  { %v327_v26 = vpack.c.bf16 %v170_v24, %v168_v18  ;;  %v337_v27 = vpack.c.bf16 %v180_v25, %v178_v19  ;;  %v153_v28 = vpop.f32.mrf.mxu0  ;;  %v163_v29 = vpop.f32.mrf.mxu1 }
  0xb0   :  { %347 = vst [vmem:[%s464_s2 + $0x20] sm:$0xff] %v327_v26  }
  0xb1   :  { %349 = vst [vmem:[%s464_s2 + $0x30] sm:$0xff] %v337_v27  }
  0xb5   :  { %v173_v30 = vpop.f32.mrf.mxu2  ;;  %v183_v31 = vpop.f32.mrf.mxu3 }
  0xb6   :  { %v155_v32 = vpop.f32.mrf.mxu0  ;;  %v165_v33 = vpop.f32.mrf.mxu1 }
  0xb7   :  { %v312_v34 = vpack.c.bf16 %v155_v32, %v153_v28  ;;  %v322_v35 = vpack.c.bf16 %v165_v33, %v163_v29 }
  0xb9   :  { %344 = vst [vmem:[%s464_s2 + $0x8] sm:$0xff] %v312_v34  }
  0xba   :  { %346 = vst [vmem:[%s464_s2 + $0x18] sm:$0xff] %v322_v35  }
  0xbd   :  { %v175_v36 = vpop.f32.mrf.mxu2  ;;  %v185_v37 = vpop.f32.mrf.mxu3 }
  0xbe   :  { %v332_v38 = vpack.c.bf16 %v175_v36, %v173_v30  ;;  %v342_v39 = vpack.c.bf16 %v185_v37, %v183_v31 }
  0xc0   :  { %348 = vst [vmem:[%s464_s2 + $0x28] sm:$0xff] %v332_v38  }
  0xc1   :  { %350 = vst [vmem:[%s464_s2 + $0x38] sm:$0xff] %v342_v39  }

// kernel: gcn_forward.4
= control target key start
LH: loop header
LB: loop body
LE: loop exit
PB: predicated region body
PF: predicated region fallthrough
CT: control target
= control target key end

     0   :  { %s789_s1 = inlined_call_operand.vmem [shape: bf16[128,128], index: 1, kind: input, shape index: {}]   ;;  %s790_s2 = inlined_call_operand.vmem [shape: f32[1,128], index: 2, kind: input, shape index: {}]   ;;  %s791_s0 = inlined_call_operand.vmem [shape: bf16[128,128], index: 0, kind: input, shape index: {}]   ;;  %s792_s3 = inlined_call_operand.vmem [shape: bf16[128,128], index: 3, kind: input, shape index: {}]   ;;  %s793_s4 = inlined_call_operand.vmem [shape: bf16[128,128], index: 4, kind: output, shape index: {}]  }
   0x1   :  { %v592_v0 = vld [vmem:[%s789_s1 + $0x38] sm:$0xff]  ;;  %v591_v1 = vld [vmem:[%s789_s1 + $0x30] sm:$0xff]  ;;  %v590_v2 = vld [vmem:[%s789_s1 + $0x28] sm:$0xff] }
   0x2   :  { %186 = vmatpush.bf16.msra.mxu0 %v592_v0  ;;  %648 = vmatpush.bf16.msra.mxu2 %v592_v0  ;;  %v589_v3 = vld [vmem:[%s789_s1 + $0x20] sm:$0xff]  ;;  %v588_v4 = vld [vmem:[%s789_s1 + $0x18] sm:$0xff]  ;;  %v587_v5 = vld [vmem:[%s789_s1 + $0x10] sm:$0xff] }
   0x3   :  { %v586_v6 = vld [vmem:[%s789_s1 + $0x8] sm:$0xff]  ;;  %v585_v7 = vld [vmem:[%s789_s1] sm:$0xff]  ;;  %v600_v12 = vld [vmem:[%s792_s3 + $0x38] sm:$0xff] }
   0x4   :  { %v577_v8 = vld [vmem:[%s791_s0] sm:$0xff]  ;;  %v578_v10 = vld [vmem:[%s791_s0 + $0x8] sm:$0xff]  ;;  %394 = vmatpush.bf16.msra.mxu1 %v600_v12  ;;  %v599_v13 = vld [vmem:[%s792_s3 + $0x30] sm:$0xff]  ;;  %656 = vmatpush.bf16.msra.mxu3 %v600_v12 }
   0x5   :  { %v581_v9 = vld [vmem:[%s791_s0 + $0x20] sm:$0xff]  ;;  %v582_v11 = vld [vmem:[%s791_s0 + $0x28] sm:$0xff]  ;;  %v579_v16 = vld [vmem:[%s791_s0 + $0x10] sm:$0xff] }
   0x6   :  { %187 = vmatpush.bf16.msra.mxu0 %v591_v1  ;;  %649 = vmatpush.bf16.msra.mxu2 %v591_v1  ;;  %v598_v14 = vld [vmem:[%s792_s3 + $0x28] sm:$0xff]  ;;  %v597_v15 = vld [vmem:[%s792_s3 + $0x20] sm:$0xff]  ;;  %v583_v17 = vld [vmem:[%s791_s0 + $0x30] sm:$0xff] }
   0x7   :  { %v580_v18 = vld [vmem:[%s791_s0 + $0x18] sm:$0xff]  ;;  %v595_v21 = vld [vmem:[%s792_s3 + $0x10] sm:$0xff]  ;;  %v594_v22 = vld [vmem:[%s792_s3 + $0x8] sm:$0xff] }
   0x8   :  { %395 = vmatpush.bf16.msra.mxu1 %v599_v13  ;;  %657 = vmatpush.bf16.msra.mxu3 %v599_v13  ;;  %v584_v19 = vld [vmem:[%s791_s0 + $0x38] sm:$0xff]  ;;  %v593_v23 = vld [vmem:[%s792_s3] sm:$0xff] }
   0x9   :  { %v596_v20 = vld [vmem:[%s792_s3 + $0x18] sm:$0xff]  ;;  %v664_v25 = vld [vmem:[%s790_s2] ss:$0 sm:$0xff] }
   0xa   :  { %188 = vmatpush.bf16.msra.mxu0 %v590_v2  ;;  %650 = vmatpush.bf16.msra.mxu2 %v590_v2 }
   0xc   :  { %396 = vmatpush.bf16.msra.mxu1 %v598_v14  ;;  %658 = vmatpush.bf16.msra.mxu3 %v598_v14 }
   0xe   :  { %189 = vmatpush.bf16.msra.mxu0 %v589_v3  ;;  %651 = vmatpush.bf16.msra.mxu2 %v589_v3 }
  0x10   :  { %397 = vmatpush.bf16.msra.mxu1 %v597_v15  ;;  %659 = vmatpush.bf16.msra.mxu3 %v597_v15 }
  0x12   :  { %190 = vmatpush.bf16.msra.mxu0 %v588_v4  ;;  %652 = vmatpush.bf16.msra.mxu2 %v588_v4 }
  0x14   :  { %398 = vmatpush.bf16.msra.mxu1 %v596_v20  ;;  %660 = vmatpush.bf16.msra.mxu3 %v596_v20 }
  0x16   :  { %191 = vmatpush.bf16.msra.mxu0 %v587_v5  ;;  %653 = vmatpush.bf16.msra.mxu2 %v587_v5 }
  0x18   :  { %399 = vmatpush.bf16.msra.mxu1 %v595_v21  ;;  %661 = vmatpush.bf16.msra.mxu3 %v595_v21 }
  0x1a   :  { %192 = vmatpush.bf16.msra.mxu0 %v586_v6  ;;  %654 = vmatpush.bf16.msra.mxu2 %v586_v6 }
  0x1c   :  { %400 = vmatpush.bf16.msra.mxu1 %v594_v22  ;;  %662 = vmatpush.bf16.msra.mxu3 %v594_v22 }
  0x1e   :  { %193 = vmatpush.bf16.msra.mxu0 %v585_v7  ;;  %655 = vmatpush.bf16.msra.mxu2 %v585_v7 }
  0x20   :  { %401 = vmatpush.bf16.msra.mxu1 %v593_v23  ;;  %663 = vmatpush.bf16.msra.mxu3 %v593_v23 }
  0x21   :  { %194 = vmatmul.bf16.vlgmr.msra.gmra.mxu0 %v577_v8  ;;  %214 = vmatmul.bf16.vlgmr.msra.gmra.mxu2 %v581_v9 }
  0x31   :  { %199 = vmatmul.bf16.gmra.mxu0 %v578_v10  ;;  %219 = vmatmul.bf16.gmra.mxu2 %v582_v11 }
  0x41   :  { %204 = vmatmul.bf16.gmra.mxu0 %v579_v16  ;;  %224 = vmatmul.bf16.gmra.mxu2 %v583_v17 }
  0x51   :  { %209 = vmatmul.bf16.gmra.mxu0 %v580_v18  ;;  %229 = vmatmul.bf16.gmra.mxu2 %v584_v19 }
  0x9e   :  { %v195_v24 = vpop.f32.mrf.mxu0 }
  0x9f   :  { %v290_v26 = vadd.f32 %v664_v25, %v195_v24 }
  0xa1   :  { %v306_v29 = vmax.f32 %v290_v26, 0.0 }
  0xa4   :  { %v215_v27 = vpop.f32.mrf.mxu2 }
  0xa5   :  { %v298_v32 = vadd.f32 %v664_v25, %v215_v27 }
  0xa6   :  { %v197_v28 = vpop.f32.mrf.mxu0 }
  0xa7   :  { %v291_v30 = vadd.f32 %v664_v25, %v197_v28  ;;  %v314_v37 = vmax.f32 %v298_v32, 0.0 }
  0xa9   :  { %v307_v31 = vmax.f32 %v291_v30, 0.0 }
  0xab   :  { %v322_v33 = vpack.c.bf16 %v307_v31, %v306_v29 }
  0xac   :  { %v217_v34 = vpop.f32.mrf.mxu2 }
  0xad   :  { %v299_v35 = vadd.f32 %v664_v25, %v217_v34  ;;  %402 = vmatmul.bf16.vlgmr.msra.gmra.mxu1 %v322_v33 }
  0xae   :  { %v200_v36 = vpop.f32.mrf.mxu0 }
  0xaf   :  { %v315_v38 = vmax.f32 %v299_v35, 0.0  ;;  %v292_v40 = vadd.f32 %v664_v25, %v200_v36 }
  0xb1   :  { %v326_v39 = vpack.c.bf16 %v315_v38, %v314_v37  ;;  %v308_v43 = vmax.f32 %v292_v40, 0.0 }
  0xb3   :  { %422 = vmatmul.bf16.vlgmr.msra.gmra.mxu3 %v326_v39 }
  0xb4   :  { %v220_v41 = vpop.f32.mrf.mxu2 }
  0xb5   :  { %v300_v46 = vadd.f32 %v664_v25, %v220_v41 }
  0xb6   :  { %v202_v42 = vpop.f32.mrf.mxu0 }
  0xb7   :  { %v293_v44 = vadd.f32 %v664_v25, %v202_v42  ;;  %v316_v51 = vmax.f32 %v300_v46, 0.0 }
  0xb9   :  { %v309_v45 = vmax.f32 %v293_v44, 0.0 }
  0xbb   :  { %v323_v47 = vpack.c.bf16 %v309_v45, %v308_v43 }
  0xbc   :  { %v222_v48 = vpop.f32.mrf.mxu2 }
  0xbd   :  { %v301_v49 = vadd.f32 %v664_v25, %v222_v48  ;;  %407 = vmatmul.bf16.gmra.mxu1 %v323_v47 }
  0xbe   :  { %v205_v50 = vpop.f32.mrf.mxu0 }
  0xbf   :  { %v317_v52 = vmax.f32 %v301_v49, 0.0  ;;  %v294_v54 = vadd.f32 %v664_v25, %v205_v50 }
  0xc1   :  { %v327_v53 = vpack.c.bf16 %v317_v52, %v316_v51  ;;  %v310_v57 = vmax.f32 %v294_v54, 0.0 }
  0xc3   :  { %427 = vmatmul.bf16.gmra.mxu3 %v327_v53 }
  0xc4   :  { %v225_v55 = vpop.f32.mrf.mxu2 }
  0xc5   :  { %v302_v60 = vadd.f32 %v664_v25, %v225_v55 }
  0xc6   :  { %v207_v56 = vpop.f32.mrf.mxu0 }
  0xc7   :  { %v295_v58 = vadd.f32 %v664_v25, %v207_v56  ;;  %v318_v1 = vmax.f32 %v302_v60, 0.0 }
  0xc9   :  { %v311_v59 = vmax.f32 %v295_v58, 0.0 }
  0xcb   :  { %v324_v61 = vpack.c.bf16 %v311_v59, %v310_v57 }
  0xcc   :  { %v227_v62 = vpop.f32.mrf.mxu2 }
  0xcd   :  { %v303_v63 = vadd.f32 %v664_v25, %v227_v62  ;;  %412 = vmatmul.bf16.gmra.mxu1 %v324_v61 }
  0xce   :  { %v210_v0 = vpop.f32.mrf.mxu0 }
  0xcf   :  { %v319_v2 = vmax.f32 %v303_v63, 0.0  ;;  %v296_v4 = vadd.f32 %v664_v25, %v210_v0 }
  0xd1   :  { %v328_v3 = vpack.c.bf16 %v319_v2, %v318_v1  ;;  %v312_v7 = vmax.f32 %v296_v4, 0.0 }
  0xd3   :  { %432 = vmatmul.bf16.gmra.mxu3 %v328_v3 }
  0xd4   :  { %v230_v5 = vpop.f32.mrf.mxu2 }
  0xd5   :  { %v304_v10 = vadd.f32 %v664_v25, %v230_v5 }
  0xd6   :  { %v212_v6 = vpop.f32.mrf.mxu0 }
  0xd7   :  { %v297_v8 = vadd.f32 %v664_v25, %v212_v6  ;;  %v320_v14 = vmax.f32 %v304_v10, 0.0 }
  0xd9   :  { %v313_v9 = vmax.f32 %v297_v8, 0.0 }
  0xdb   :  { %v325_v11 = vpack.c.bf16 %v313_v9, %v312_v7 }
  0xdc   :  { %v232_v12 = vpop.f32.mrf.mxu2 }
  0xdd   :  { %v305_v13 = vadd.f32 %v664_v25, %v232_v12  ;;  %417 = vmatmul.bf16.gmra.mxu1 %v325_v11 }
  0xdf   :  { %v321_v15 = vmax.f32 %v305_v13, 0.0 }
  0xe1   :  { %v329_v16 = vpack.c.bf16 %v321_v15, %v320_v14 }
  0xe3   :  { %437 = vmatmul.bf16.gmra.mxu3 %v329_v16 }
 0x12a   :  { %v403_v17 = vpop.f32.mrf.mxu1 }
 0x132   :  { %v405_v18 = vpop.f32.mrf.mxu1 }
 0x133   :  { %v604_v19 = vpack.c.bf16 %v405_v18, %v403_v17 }
 0x135   :  { %605 = vst [vmem:[%s793_s4] sm:$0xff] %v604_v19  }
 0x136   :  { %v423_v20 = vpop.f32.mrf.mxu3 }
 0x13a   :  { %v408_v21 = vpop.f32.mrf.mxu1 }
 0x13e   :  { %v425_v22 = vpop.f32.mrf.mxu3 }
 0x13f   :  { %v624_v23 = vpack.c.bf16 %v425_v22, %v423_v20 }
 0x141   :  { %644 = vst [vmem:[%s793_s4 + $0x20] sm:$0xff] %v624_v23  }
 0x142   :  { %v410_v24 = vpop.f32.mrf.mxu1 }
 0x143   :  { %v609_v25 = vpack.c.bf16 %v410_v24, %v408_v21 }
 0x145   :  { %641 = vst [vmem:[%s793_s4 + $0x8] sm:$0xff] %v609_v25  }
 0x146   :  { %v428_v26 = vpop.f32.mrf.mxu3 }
 0x14a   :  { %v413_v27 = vpop.f32.mrf.mxu1 }
 0x14e   :  { %v430_v28 = vpop.f32.mrf.mxu3 }
 0x14f   :  { %v629_v29 = vpack.c.bf16 %v430_v28, %v428_v26 }
 0x151   :  { %645 = vst [vmem:[%s793_s4 + $0x28] sm:$0xff] %v629_v29  }
 0x152   :  { %v415_v30 = vpop.f32.mrf.mxu1 }
 0x153   :  { %v614_v31 = vpack.c.bf16 %v415_v30, %v413_v27 }
 0x155   :  { %642 = vst [vmem:[%s793_s4 + $0x10] sm:$0xff] %v614_v31  }
 0x156   :  { %v433_v32 = vpop.f32.mrf.mxu3 }
 0x15a   :  { %v418_v33 = vpop.f32.mrf.mxu1 }
 0x15e   :  { %v435_v34 = vpop.f32.mrf.mxu3 }
 0x15f   :  { %v634_v35 = vpack.c.bf16 %v435_v34, %v433_v32 }
 0x161   :  { %646 = vst [vmem:[%s793_s4 + $0x30] sm:$0xff] %v634_v35  }
 0x162   :  { %v420_v36 = vpop.f32.mrf.mxu1 }
 0x163   :  { %v619_v37 = vpack.c.bf16 %v420_v36, %v418_v33 }
 0x165   :  { %643 = vst [vmem:[%s793_s4 + $0x18] sm:$0xff] %v619_v37  }
 0x166   :  { %v438_v38 = vpop.f32.mrf.mxu3 }
 0x16e   :  { %v440_v39 = vpop.f32.mrf.mxu3 }
 0x16f   :  { %v639_v40 = vpack.c.bf16 %v440_v39, %v438_v38 }
 0x171   :  { %647 = vst [vmem:[%s793_s4 + $0x38] sm:$0xff] %v639_v40  }

// kernel: gcn_forward.5
= control target key start
LH: loop header
LB: loop body
LE: loop exit
PB: predicated region body
PF: predicated region fallthrough
CT: control target
= control target key end

     0   :  { %v303_v16 = vlaneseq  ;;  %s949_s1 = inlined_call_operand.vmem [shape: bf16[128,128], index: 1, kind: input, shape index: {}]   ;;  %s950_s2 = inlined_call_operand.vmem [shape: f32[1,128], index: 2, kind: input, shape index: {}]   ;;  %s951_s0 = inlined_call_operand.vmem [shape: bf16[128,128], index: 0, kind: input, shape index: {}]   ;;  %s952_s3 = inlined_call_operand.vmem [shape: f32[128,128], index: 3, kind: output, shape index: {}]  }
   0x1   :  { %v583_v0 = vld [vmem:[%s949_s1 + $0x38] sm:$0xff]  ;;  %v582_v1 = vld [vmem:[%s949_s1 + $0x30] sm:$0xff]  ;;  %v581_v2 = vld [vmem:[%s949_s1 + $0x28] sm:$0xff] }
   0x2   :  { %183 = vmatpush.bf16.msra.mxu0 %v583_v0  ;;  %584 = vmatpush.bf16.msra.mxu1 %v583_v0  ;;  %v580_v3 = vld [vmem:[%s949_s1 + $0x20] sm:$0xff]  ;;  %v579_v4 = vld [vmem:[%s949_s1 + $0x18] sm:$0xff]  ;;  %v578_v5 = vld [vmem:[%s949_s1 + $0x10] sm:$0xff]  ;;  %v741_v17 = vand.u32 127, %v303_v16 }
   0x3   :  { %585 = vmatpush.bf16.msra.mxu2 %v583_v0  ;;  %586 = vmatpush.bf16.msra.mxu3 %v583_v0  ;;  %v577_v6 = vld [vmem:[%s949_s1 + $0x8] sm:$0xff]  ;;  %v576_v7 = vld [vmem:[%s949_s1] sm:$0xff]  ;;  %v570_v9 = vld [vmem:[%s951_s0 + $0x10] sm:$0xff] }
   0x4   :  { %v568_v8 = vld [vmem:[%s951_s0] sm:$0xff]  ;;  %v574_v11 = vld [vmem:[%s951_s0 + $0x30] sm:$0xff]  ;;  %v569_v12 = vld [vmem:[%s951_s0 + $0x8] sm:$0xff]  ;;  %vm305_vm0 = vcmp.lt.s32.totalorder %v741_v17, 8 }
   0x5   :  { %v572_v10 = vld [vmem:[%s951_s0 + $0x20] sm:$0xff]  ;;  %v571_v13 = vld [vmem:[%s951_s0 + $0x18] sm:$0xff]  ;;  %v573_v14 = vld [vmem:[%s951_s0 + $0x28] sm:$0xff] }
   0x6   :  { %184 = vmatpush.bf16.msra.mxu0 %v582_v1  ;;  %587 = vmatpush.bf16.msra.mxu1 %v582_v1  ;;  %v575_v15 = vld [vmem:[%s951_s0 + $0x38] sm:$0xff]  ;;  %v746_v18 = vld [vmem:[%s950_s2] ss:$0 sm:$0xff] }
   0x7   :  { %588 = vmatpush.bf16.msra.mxu2 %v582_v1  ;;  %589 = vmatpush.bf16.msra.mxu3 %v582_v1 }
   0xa   :  { %185 = vmatpush.bf16.msra.mxu0 %v581_v2  ;;  %590 = vmatpush.bf16.msra.mxu1 %v581_v2 }
   0xb   :  { %591 = vmatpush.bf16.msra.mxu2 %v581_v2  ;;  %592 = vmatpush.bf16.msra.mxu3 %v581_v2 }
   0xe   :  { %186 = vmatpush.bf16.msra.mxu0 %v580_v3  ;;  %593 = vmatpush.bf16.msra.mxu1 %v580_v3 }
   0xf   :  { %594 = vmatpush.bf16.msra.mxu2 %v580_v3  ;;  %595 = vmatpush.bf16.msra.mxu3 %v580_v3 }
  0x12   :  { %187 = vmatpush.bf16.msra.mxu0 %v579_v4  ;;  %596 = vmatpush.bf16.msra.mxu1 %v579_v4 }
  0x13   :  { %597 = vmatpush.bf16.msra.mxu2 %v579_v4  ;;  %598 = vmatpush.bf16.msra.mxu3 %v579_v4 }
  0x16   :  { %188 = vmatpush.bf16.msra.mxu0 %v578_v5  ;;  %599 = vmatpush.bf16.msra.mxu1 %v578_v5 }
  0x17   :  { %600 = vmatpush.bf16.msra.mxu2 %v578_v5  ;;  %601 = vmatpush.bf16.msra.mxu3 %v578_v5 }
  0x1a   :  { %189 = vmatpush.bf16.msra.mxu0 %v577_v6  ;;  %602 = vmatpush.bf16.msra.mxu1 %v577_v6 }
  0x1b   :  { %603 = vmatpush.bf16.msra.mxu2 %v577_v6  ;;  %604 = vmatpush.bf16.msra.mxu3 %v577_v6 }
  0x1e   :  { %190 = vmatpush.bf16.msra.mxu0 %v576_v7  ;;  %605 = vmatpush.bf16.msra.mxu1 %v576_v7 }
  0x1f   :  { %606 = vmatpush.bf16.msra.mxu2 %v576_v7  ;;  %607 = vmatpush.bf16.msra.mxu3 %v576_v7 }
  0x21   :  { %191 = vmatmul.bf16.vlgmr.msra.gmra.mxu0 %v568_v8  ;;  %201 = vmatmul.bf16.vlgmr.msra.gmra.mxu1 %v570_v9 }
  0x22   :  { %211 = vmatmul.bf16.vlgmr.msra.gmra.mxu2 %v572_v10  ;;  %221 = vmatmul.bf16.vlgmr.msra.gmra.mxu3 %v574_v11 }
  0x31   :  { %196 = vmatmul.bf16.gmra.mxu0 %v569_v12  ;;  %206 = vmatmul.bf16.gmra.mxu1 %v571_v13 }
  0x32   :  { %216 = vmatmul.bf16.gmra.mxu2 %v573_v14  ;;  %226 = vmatmul.bf16.gmra.mxu3 %v575_v15 }
  0x9e   :  { %v192_v19 = vpop.f32.mrf.mxu0  ;;  %v202_v20 = vpop.f32.mrf.mxu1 }
  0x9f   :  { %v287_v21 = vadd.f32 %v746_v18, %v192_v19  ;;  %v291_v22 = vadd.f32 %v746_v18, %v202_v20 }
  0xa1   :  { %v310_v23 = vsel %vm305_vm0, %v291_v22, -1e+30  ;;  %v306_v24 = vsel %vm305_vm0, %v287_v21, -1e+30 }
  0xa2   :  { %330 = vmax.xlane.f32.xlu2 %v310_v23  ;;  %322 = vmax.xlane.f32.xlu0 %v306_v24 }
  0xa5   :  { %v212_v25 = vpop.f32.mrf.mxu2  ;;  %v222_v26 = vpop.f32.mrf.mxu3 }
  0xa6   :  { %v295_v27 = vadd.f32 %v746_v18, %v212_v25  ;;  %v299_v28 = vadd.f32 %v746_v18, %v222_v26  ;;  %v194_v29 = vpop.f32.mrf.mxu0  ;;  %v204_v32 = vpop.f32.mrf.mxu1 }
  0xa7   :  { %v288_v33 = vadd.f32 %v746_v18, %v194_v29  ;;  %v292_v34 = vadd.f32 %v746_v18, %v204_v32 }
  0xa8   :  { %v314_v30 = vsel %vm305_vm0, %v295_v27, -1e+30  ;;  %v318_v31 = vsel %vm305_vm0, %v299_v28, -1e+30 }
  0xa9   :  { %v311_v39 = vsel %vm305_vm0, %v292_v34, -1e+30  ;;  %v307_v40 = vsel %vm305_vm0, %v288_v33, -1e+30 }
  0xaa   :  { %338 = vmax.xlane.f32.xlu2 %v314_v30  ;;  %346 = vmax.xlane.f32.xlu0 %v318_v31 }
  0xad   :  { %v214_v35 = vpop.f32.mrf.mxu2  ;;  %v224_v36 = vpop.f32.mrf.mxu3 }
  0xae   :  { %v197_v37 = vpop.f32.mrf.mxu0  ;;  %v296_v42 = vadd.f32 %v746_v18, %v214_v35  ;;  %v207_v47 = vpop.f32.mrf.mxu1  ;;  %v300_v1 = vadd.f32 %v746_v18, %v224_v36 }
  0xaf   :  { %v289_v38 = vadd.f32 %v746_v18, %v197_v37  ;;  %v293_v50 = vadd.f32 %v746_v18, %v207_v47 }
  0xb0   :  { %v781_v48 = vsel %vm305_vm0, %v296_v42, -1e+30  ;;  %v824_v2 = vsel %vm305_vm0, %v300_v1, -1e+30 }
  0xb1   :  { %v770_v41 = vsel %vm305_vm0, %v289_v38, -1e+30  ;;  %v790_v54 = vsel %vm305_vm0, %v293_v50, -1e+30 }
  0xb2   :  { %332 = vmax.xlane.f32.xlu2 %v311_v39  ;;  %324 = vmax.xlane.f32.xlu0 %v307_v40 }
  0xb3   :  { %326 = vmax.xlane.f32.xlu1 %v770_v41 }
  0xb5   :  { %v217_v43 = vpop.f32.mrf.mxu2  ;;  %v227_v45 = vpop.f32.mrf.mxu3 }
  0xb6   :  { %v297_v44 = vadd.f32 %v746_v18, %v217_v43  ;;  %v199_v49 = vpop.f32.mrf.mxu0  ;;  %v301_v57 = vadd.f32 %v746_v18, %v227_v45  ;;  %v209_v59 = vpop.f32.mrf.mxu1 }
  0xb7   :  { %v290_v52 = vadd.f32 %v746_v18, %v199_v49  ;;  %v294_v61 = vadd.f32 %v746_v18, %v209_v59 }
  0xb8   :  { %v777_v46 = vsel %vm305_vm0, %v297_v44, -1e+30  ;;  %v808_v62 = vsel %vm305_vm0, %v301_v57, -1e+30 }
  0xb9   :  { %v801_v58 = vsel %vm305_vm0, %v290_v52, -1e+30  ;;  %v818_v0 = vsel %vm305_vm0, %v294_v61, -1e+30 }
  0xba   :  { %340 = vmax.xlane.f32.xlu0 %v781_v48 }
  0xbb   :  { %342 = vmax.xlane.f32.xlu1 %v777_v46 }
  0xbd   :  { %v219_v51 = vpop.f32.mrf.mxu2  ;;  %v229_v56 = vpop.f32.mrf.mxu3 }
  0xbe   :  { %v298_v53 = vadd.f32 %v746_v18, %v219_v51  ;;  %v302_v60 = vadd.f32 %v746_v18, %v229_v56 }
  0xc0   :  { %v794_v55 = vsel %vm305_vm0, %v298_v53, -1e+30  ;;  %v812_v63 = vsel %vm305_vm0, %v302_v60, -1e+30 }
  0xc1   :  { %344 = vmax.xlane.f32.xlu2 %v794_v55 }
  0xc2   :  { %334 = vmax.xlane.f32.xlu0 %v790_v54 }
  0xc3   :  { %328 = vmax.xlane.f32.xlu1 %v801_v58 }
  0xc9   :  { %350 = vmax.xlane.f32.xlu2 %v808_v62 }
  0xca   :  { %352 = vmax.xlane.f32.xlu0 %v812_v63 }
  0xcb   :  { %336 = vmax.xlane.f32.xlu1 %v818_v0 }
  0xd3   :  { %348 = vmax.xlane.f32.xlu1 %v824_v2 }
 0x115   :  { %v331_v3 = vpop.xlane.xlu2 %330  ;;  %v323_v4 = vpop.xlane.xlu0 %322 }
 0x116   :  { %v827_v5 = vsub.f32 %v310_v23, %v331_v3  ;;  %v829_v6 = vsub.f32 %v306_v24, %v323_v4 }
 0x118   :  { %v378_v7 = vmul.f32 1.442695, %v827_v5  ;;  %v370_v8 = vmul.f32 1.442695, %v829_v6 }
 0x11a   :  { %609 = vpow2.f32 %v378_v7 }
 0x11b   :  { %611 = vpow2.f32 %v370_v8 }
 0x11d   :  { %v339_v9 = vpop.xlane.xlu2 %338  ;;  %v347_v10 = vpop.xlane.xlu0 %346 }
 0x11e   :  { %v833_v11 = vsub.f32 %v314_v30, %v339_v9  ;;  %v835_v12 = vsub.f32 %v318_v31, %v347_v10 }
 0x120   :  { %v610_v13 = vpop.eup %609  ;;  %v386_v14 = vmul.f32 1.442695, %v833_v11  ;;  %v394_v15 = vmul.f32 1.442695, %v835_v12 }
 0x121   :  { %v612_v16 = vpop.eup %611  ;;  %410 = vadd.xlane.f32.xlu2 %v610_v13 }
 0x122   :  { %613 = vpow2.f32 %v386_v14  ;;  %402 = vadd.xlane.f32.xlu1 %v612_v16 }
 0x123   :  { %615 = vpow2.f32 %v394_v15 }
 0x125   :  { %v333_v17 = vpop.xlane.xlu2 %332  ;;  %v325_v18 = vpop.xlane.xlu0 %324 }
 0x126   :  { %v839_v19 = vsub.f32 %v311_v39, %v333_v17  ;;  %v841_v20 = vsub.f32 %v307_v40, %v325_v18  ;;  %v327_v21 = vpop.xlane.xlu1 %326 }
 0x127   :  { %v846_v26 = vsub.f32 %v770_v41, %v327_v21 }
 0x128   :  { %v614_v22 = vpop.eup %613  ;;  %v380_v23 = vmul.f32 1.442695, %v839_v19  ;;  %v372_v24 = vmul.f32 1.442695, %v841_v20 }
 0x129   :  { %v616_v25 = vpop.eup %615  ;;  %418 = vadd.xlane.f32.xlu0 %v614_v22  ;;  %v374_v27 = vmul.f32 1.442695, %v846_v26 }
 0x12a   :  { %617 = vpow2.f32 %v380_v23  ;;  %426 = vadd.xlane.f32.xlu1 %v616_v25 }
 0x12b   :  { %619 = vpow2.f32 %v372_v24 }
 0x12c   :  { %621 = vpow2.f32 %v374_v27 }
 0x12d   :  { %v341_v28 = vpop.xlane.xlu0 %340 }
 0x12e   :  { %v850_v29 = vsub.f32 %v781_v48, %v341_v28  ;;  %v343_v30 = vpop.xlane.xlu1 %342 }
 0x12f   :  { %v853_v31 = vsub.f32 %v777_v46, %v343_v30 }
 0x130   :  { %v618_v32 = vpop.eup %617  ;;  %v388_v33 = vmul.f32 1.442695, %v850_v29 }
 0x131   :  { %v620_v34 = vpop.eup %619  ;;  %v390_v35 = vmul.f32 1.442695, %v853_v31  ;;  %412 = vadd.xlane.f32.xlu0 %v618_v32 }
 0x132   :  { %623 = vpow2.f32 %v388_v33  ;;  %404 = vadd.xlane.f32.xlu2 %v620_v34  ;;  %v622_v41 = vpop.eup %621 }
 0x133   :  { %625 = vpow2.f32 %v390_v35 }
 0x134   :  { %v345_v36 = vpop.xlane.xlu2 %344 }
 0x135   :  { %v858_v37 = vsub.f32 %v794_v55, %v345_v36  ;;  %v335_v38 = vpop.xlane.xlu0 %334 }
 0x136   :  { %v861_v39 = vsub.f32 %v790_v54, %v335_v38  ;;  %v329_v40 = vpop.xlane.xlu1 %328 }
 0x137   :  { %v392_v42 = vmul.f32 1.442695, %v858_v37  ;;  %v866_v46 = vsub.f32 %v801_v58, %v329_v40 }
 0x138   :  { %v624_v43 = vpop.eup %623  ;;  %v382_v44 = vmul.f32 1.442695, %v861_v39 }
 0x139   :  { %v626_v45 = vpop.eup %625  ;;  %627 = vpow2.f32 %v392_v42  ;;  %406 = vadd.xlane.f32.xlu0 %v622_v41  ;;  %420 = vadd.xlane.f32.xlu1 %v624_v43  ;;  %v376_v48 = vmul.f32 1.442695, %v866_v46 }
 0x13a   :  { %629 = vpow2.f32 %v382_v44  ;;  %422 = vadd.xlane.f32.xlu2 %v626_v45 }
 0x13b   :  { %631 = vpow2.f32 %v376_v48 }
 0x13c   :  { %v351_v47 = vpop.xlane.xlu2 %350 }
 0x13d   :  { %v870_v49 = vsub.f32 %v808_v62, %v351_v47  ;;  %v353_v53 = vpop.xlane.xlu0 %352 }
 0x13e   :  { %v337_v50 = vpop.xlane.xlu1 %336  ;;  %v878_v57 = vsub.f32 %v812_v63, %v353_v53 }
 0x13f   :  { %v628_v51 = vpop.eup %627  ;;  %v398_v52 = vmul.f32 1.442695, %v870_v49  ;;  %v874_v54 = vsub.f32 %v818_v0, %v337_v50 }
 0x140   :  { %v630_v55 = vpop.eup %629  ;;  %v400_v58 = vmul.f32 1.442695, %v878_v57 }
 0x141   :  { %v384_v56 = vmul.f32 1.442695, %v874_v54  ;;  %424 = vadd.xlane.f32.xlu0 %v628_v51  ;;  %414 = vadd.xlane.f32.xlu1 %v630_v55  ;;  %633 = vpow2.f32 %v398_v52  ;;  %v632_v60 = vpop.eup %631 }
 0x143   :  { %635 = vpow2.f32 %v384_v56 }
 0x144   :  { %637 = vpow2.f32 %v400_v58 }
 0x146   :  { %v349_v59 = vpop.xlane.xlu1 %348 }
 0x147   :  { %v882_v61 = vsub.f32 %v824_v2, %v349_v59  ;;  %v634_v62 = vpop.eup %633 }
 0x149   :  { %v636_v0 = vpop.eup %635  ;;  %v396_v1 = vmul.f32 1.442695, %v882_v61  ;;  %430 = vadd.xlane.f32.xlu0 %v634_v62  ;;  %408 = vadd.xlane.f32.xlu1 %v632_v60 }
 0x14a   :  { %416 = vadd.xlane.f32.xlu2 %v636_v0  ;;  %v638_v3 = vpop.eup %637 }
 0x14b   :  { %639 = vpow2.f32 %v396_v1 }
 0x151   :  { %v640_v63 = vpop.eup %639  ;;  %432 = vadd.xlane.f32.xlu1 %v638_v3 }
 0x152   :  { %428 = vadd.xlane.f32.xlu2 %v640_v63 }
 0x194   :  { %v411_v4 = vpop.xlane.xlu2 %410 }
 0x195   :  { %641 = vlog2.f32 %v411_v4  ;;  %v403_v7 = vpop.xlane.xlu1 %402 }
 0x196   :  { %643 = vlog2.f32 %v403_v7 }
 0x19b   :  { %v642_v8 = vpop.eup %641 }
 0x19c   :  { %v644_v2 = vpop.eup %643  ;;  %v443_v9 = vmul.f32 0.6931472, %v642_v8  ;;  %v419_v10 = vpop.xlane.xlu0 %418 }
 0x19d   :  { %v435_v13 = vmul.f32 0.6931472, %v644_v2  ;;  %645 = vlog2.f32 %v419_v10  ;;  %v427_v14 = vpop.xlane.xlu1 %426 }
 0x19e   :  { %v470_v15 = vsub.f32 %v827_v5, %v443_v9  ;;  %647 = vlog2.f32 %v427_v14 }
 0x19f   :  { %v466_v16 = vsub.f32 %v829_v6, %v435_v13 }
 0x1a0   :  { %486 = vst [vmem:[%s952_s3 + $0x20] sm:$0xff] %v470_v15 }
 0x1a1   :  { %482 = vst [vmem:[%s952_s3] sm:$0xff] %v466_v16 }
 0x1a3   :  { %v646_v17 = vpop.eup %645 }
 0x1a4   :  { %v648_v18 = vpop.eup %647  ;;  %v451_v21 = vmul.f32 0.6931472, %v646_v17  ;;  %v413_v22 = vpop.xlane.xlu0 %412 }
 0x1a5   :  { %v459_v23 = vmul.f32 0.6931472, %v648_v18  ;;  %v405_v24 = vpop.xlane.xlu2 %404  ;;  %649 = vlog2.f32 %v413_v22 }
 0x1a6   :  { %v474_v5 = vsub.f32 %v833_v11, %v451_v21  ;;  %651 = vlog2.f32 %v405_v24 }
 0x1a7   :  { %v478_v6 = vsub.f32 %v835_v12, %v459_v23 }
 0x1a8   :  { %490 = vst [vmem:[%s952_s3 + $0x40] sm:$0xff] %v474_v5 }
 0x1a9   :  { %494 = vst [vmem:[%s952_s3 + $0x60] sm:$0xff] %v478_v6 }
 0x1ab   :  { %v650_v25 = vpop.eup %649 }
 0x1ac   :  { %v652_v27 = vpop.eup %651  ;;  %v445_v28 = vmul.f32 0.6931472, %v650_v25  ;;  %v407_v30 = vpop.xlane.xlu0 %406 }
 0x1ad   :  { %v421_v32 = vpop.xlane.xlu1 %420  ;;  %v437_v33 = vmul.f32 0.6931472, %v652_v27  ;;  %653 = vlog2.f32 %v407_v30  ;;  %v423_v34 = vpop.xlane.xlu2 %422 }
 0x1ae   :  { %v471_v11 = vsub.f32 %v839_v19, %v445_v28  ;;  %655 = vlog2.f32 %v423_v34 }
 0x1af   :  { %v467_v12 = vsub.f32 %v841_v20, %v437_v33  ;;  %657 = vlog2.f32 %v421_v32 }
 0x1b0   :  { %487 = vst [vmem:[%s952_s3 + $0x28] sm:$0xff] %v471_v11 }
 0x1b1   :  { %483 = vst [vmem:[%s952_s3 + $0x8] sm:$0xff] %v467_v12 }
 0x1b3   :  { %v654_v35 = vpop.eup %653 }
 0x1b4   :  { %v656_v36 = vpop.eup %655  ;;  %v439_v38 = vmul.f32 0.6931472, %v654_v35  ;;  %v425_v40 = vpop.xlane.xlu0 %424 }
 0x1b5   :  { %v415_v41 = vpop.xlane.xlu1 %414  ;;  %v658_v42 = vpop.eup %657  ;;  %v455_v43 = vmul.f32 0.6931472, %v656_v36  ;;  %659 = vlog2.f32 %v425_v40 }
 0x1b6   :  { %v468_v19 = vsub.f32 %v846_v26, %v439_v38  ;;  %v453_v20 = vmul.f32 0.6931472, %v658_v42  ;;  %661 = vlog2.f32 %v415_v41 }
 0x1b7   :  { %v476_v44 = vsub.f32 %v853_v31, %v455_v43 }
 0x1b8   :  { %484 = vst [vmem:[%s952_s3 + $0x10] sm:$0xff] %v468_v19  ;;  %v475_v45 = vsub.f32 %v850_v29, %v453_v20 }
 0x1b9   :  { %492 = vst [vmem:[%s952_s3 + $0x50] sm:$0xff] %v476_v44 }
 0x1ba   :  { %491 = vst [vmem:[%s952_s3 + $0x48] sm:$0xff] %v475_v45 }
 0x1bb   :  { %v660_v47 = vpop.eup %659 }
 0x1bc   :  { %v662_v26 = vpop.eup %661  ;;  %v457_v48 = vmul.f32 0.6931472, %v660_v47  ;;  %v431_v50 = vpop.xlane.xlu0 %430 }
 0x1bd   :  { %v409_v51 = vpop.xlane.xlu1 %408  ;;  %v447_v31 = vmul.f32 0.6931472, %v662_v26  ;;  %663 = vlog2.f32 %v431_v50  ;;  %v417_v52 = vpop.xlane.xlu2 %416 }
 0x1be   :  { %v477_v53 = vsub.f32 %v858_v37, %v457_v48  ;;  %665 = vlog2.f32 %v417_v52 }
 0x1bf   :  { %v472_v29 = vsub.f32 %v861_v39, %v447_v31  ;;  %667 = vlog2.f32 %v409_v51 }
 0x1c0   :  { %493 = vst [vmem:[%s952_s3 + $0x58] sm:$0xff] %v477_v53 }
 0x1c1   :  { %488 = vst [vmem:[%s952_s3 + $0x30] sm:$0xff] %v472_v29 }
 0x1c3   :  { %v664_v55 = vpop.eup %663 }
 0x1c4   :  { %v666_v56 = vpop.eup %665  ;;  %v463_v58 = vmul.f32 0.6931472, %v664_v55 }
 0x1c5   :  { %v433_v59 = vpop.xlane.xlu1 %432  ;;  %v668_v60 = vpop.eup %667  ;;  %v449_v62 = vmul.f32 0.6931472, %v666_v56 }
 0x1c6   :  { %v429_v0 = vpop.xlane.xlu2 %428  ;;  %669 = vlog2.f32 %v433_v59  ;;  %v480_v37 = vsub.f32 %v870_v49, %v463_v58  ;;  %v441_v39 = vmul.f32 0.6931472, %v668_v60 }
 0x1c7   :  { %671 = vlog2.f32 %v429_v0  ;;  %v473_v1 = vsub.f32 %v874_v54, %v449_v62 }
 0x1c8   :  { %496 = vst [vmem:[%s952_s3 + $0x70] sm:$0xff] %v480_v37  ;;  %v469_v3 = vsub.f32 %v866_v46, %v441_v39 }
 0x1c9   :  { %489 = vst [vmem:[%s952_s3 + $0x38] sm:$0xff] %v473_v1 }
 0x1ca   :  { %485 = vst [vmem:[%s952_s3 + $0x18] sm:$0xff] %v469_v3 }
 0x1cc   :  { %v670_v63 = vpop.eup %669 }
 0x1cd   :  { %v672_v49 = vpop.eup %671  ;;  %v465_v4 = vmul.f32 0.6931472, %v670_v63 }
 0x1ce   :  { %v461_v7 = vmul.f32 0.6931472, %v672_v49 }
 0x1cf   :  { %v481_v54 = vsub.f32 %v878_v57, %v465_v4 }
 0x1d0   :  { %v479_v8 = vsub.f32 %v882_v61, %v461_v7 }
 0x1d1   :  { %497 = vst [vmem:[%s952_s3 + $0x78] sm:$0xff] %v481_v54 }
 0x1d2   :  { %495 = vst [vmem:[%s952_s3 + $0x68] sm:$0xff] %v479_v8 }

</bundles_post_ra>
